<compile_context>
chip_gen: v7x
topology: tpu7x:2x2x1
jax: 0.10.0
libtpu: 0.0.40
codegen_flags: <defaults>
</compile_context>

<pallas_src>
import functools

import jax
import jax.numpy as jnp
from jax.experimental import pallas as pl
from jax.experimental.pallas import tpu as pltpu

LOG_STD_MIN = -20.0
LOG_STD_MAX = 2.0


def _round_up(x, m):
    return (x + m - 1) // m * m


def actor_kernel(x_ref, w1_ref, b1_ref, w4_ref, b4_ref, wh_ref, bh_ref,
                 out_ref, *, action_size, log_std_min, log_std_max):
    # linear1 + relu   (bf16 MXU inputs, f32 accumulation, f32 bias/relu)
    h = jnp.dot(x_ref[...], w1_ref[...],
                preferred_element_type=jnp.float32) + b1_ref[...]
    h = jnp.maximum(h, 0.0)
    # linear4 + relu
    h = jnp.dot(h.astype(w4_ref.dtype), w4_ref[...],
                preferred_element_type=jnp.float32) + b4_ref[...]
    h = jnp.maximum(h, 0.0)
    # fused heads: columns [0, A) = mean, [A, 2A) = log_std, rest zero padding
    out = jnp.dot(h.astype(wh_ref.dtype), wh_ref[...],
                  preferred_element_type=jnp.float32) + bh_ref[...]
    # clamp only the log_std lanes (VPU work, hidden under the MXU; mean lanes
    # are untouched so forward() semantics are preserved)
    col = jax.lax.broadcasted_iota(jnp.int32, out.shape, dimension=1)
    is_log_std = (col >= action_size) & (col < 2 * action_size)
    out_ref[...] = jnp.where(
        is_log_std, jnp.clip(out, log_std_min, log_std_max), out)


def actor_heads(state, packed_params, *, action_size,
                log_std_min=LOG_STD_MIN, log_std_max=LOG_STD_MAX,
                batch_tile=256):
    """state: [B, state_size] f32 -> (mean [B, A] f32, clamped log_std [B, A] f32)."""
    w1, b1, w4, b4, wh, bh = packed_params
    B, S = state.shape
    H = w1.shape[1]
    HP = wh.shape[1]            # padded (lane-dense) head width, multiple of 128

    # Batch tile: multiple of 8 sublanes; pad B up to a multiple of TB.
    TB = _round_up(min(batch_tile, _round_up(B, 8)), 8)
    B_pad = _round_up(B, TB)
    if B_pad != B:
        state = jnp.pad(state, ((0, B_pad - B), (0, 0)))
    x = state.astype(jnp.bfloat16)

    kernel = functools.partial(actor_kernel, action_size=action_size,
                               log_std_min=log_std_min,
                               log_std_max=log_std_max)

    flops = 2 * B_pad * (S * H + H * H + H * HP)
    bytes_accessed = (x.size * 2
                      + (w1.size + w4.size + wh.size) * 2
                      + (b1.size + b4.size + bh.size) * 4
                      + B_pad * HP * 4)

    out = pl.pallas_call(
        kernel,
        out_shape=jax.ShapeDtypeStruct((B_pad, HP), jnp.float32),
        grid=(B_pad // TB,),
        in_specs=[
            pl.BlockSpec((TB, S), lambda i: (i, 0)),     # state tile (pipelined)
            pl.BlockSpec((S, H), lambda i: (0, 0)),      # w1  (VMEM-resident)
            pl.BlockSpec((1, H), lambda i: (0, 0)),      # b1
            pl.BlockSpec((H, H), lambda i: (0, 0)),      # w4
            pl.BlockSpec((1, H), lambda i: (0, 0)),      # b4
            pl.BlockSpec((H, HP), lambda i: (0, 0)),     # fused head weight
            pl.BlockSpec((1, HP), lambda i: (0, 0)),     # fused head bias
        ],
        out_specs=pl.BlockSpec((TB, HP), lambda i: (i, 0)),
        compiler_params=pltpu.CompilerParams(
            dimension_semantics=("parallel",),           # v7x dual-TC sharding
            vmem_limit_bytes=32 * 1024 * 1024,           # safe on v7x's 64 MiB
        ),
        cost_estimate=pl.CostEstimate(
            flops=flops, transcendentals=0, bytes_accessed=bytes_accessed),
    )(x, w1, b1, w4, b4, wh, bh)

    mean = out[:B, :action_size]
    log_std = out[:B, action_size:2 * action_size]
    return mean, log_std


def actor_forward(state, packed_params, *, action_size, **kwargs):
    """Equivalent of Actor.forward(state) -> mean."""
    mean, _ = actor_heads(state, packed_params, action_size=action_size, **kwargs)
    return mean


def init_actor_params(key, state_size, hidden_size, action_size, init_w=0.003):
    """Deterministic synthetic init mirroring the PyTorch module's __init__.

    Weights are [in, out] (pre-transposed); biases are [1, out] f32.
    """
    ks = jax.random.split(key, 8)

    def torch_default_linear(kw, kb, fan_in, fan_out):
        bound = 1.0 / jnp.sqrt(jnp.float32(fan_in))
        w = jax.random.uniform(kw, (fan_in, fan_out), jnp.float32, -bound, bound)
        b = jax.random.uniform(kb, (1, fan_out), jnp.float32, -bound, bound)
        return w, b

    w1, b1 = torch_default_linear(ks[0], ks[1], state_size, hidden_size)   # linear1
    w4, b4 = torch_default_linear(ks[2], ks[3], hidden_size, hidden_size)  # linear4
    wm = jax.random.uniform(ks[4], (hidden_size, action_size), jnp.float32,
                            -init_w, init_w)                               # mean_linear
    bm = jax.random.uniform(ks[5], (1, action_size), jnp.float32, -init_w, init_w)
    wls = jax.random.uniform(ks[6], (hidden_size, action_size), jnp.float32,
                             -init_w, init_w)                              # log_std_linear
    bls = jax.random.uniform(ks[7], (1, action_size), jnp.float32, -init_w, init_w)
    # TODO(synk): evaluate()/get_action() (Normal.rsample, tanh squash, log_prob)
    # are stochastic sampling glue outside forward(); could later be fused with
    # pltpu.prng_seed/prng_random_bits but are not implemented here.
    return (w1, b1, w4, b4, wm, bm, wls, bls)


def pack_actor_params(raw_params, *, action_size):
    """Build kernel-ready params: bf16 weights, f32 biases, fused+padded head."""
    w1, b1, w4, b4, wm, bm, wls, bls = raw_params
    hidden = w1.shape[1]
    head_pad = _round_up(max(2 * action_size, 128), 128)   # lane-dense head width
    wh = jnp.zeros((hidden, head_pad), jnp.float32)
    wh = wh.at[:, :action_size].set(wm)
    wh = wh.at[:, action_size:2 * action_size].set(wls)
    bh = jnp.zeros((1, head_pad), jnp.float32)
    bh = bh.at[:, :action_size].set(bm[0])
    bh = bh.at[:, action_size:2 * action_size].set(bls[0])
    return (w1.astype(jnp.bfloat16), b1,
            w4.astype(jnp.bfloat16), b4,
            wh.astype(jnp.bfloat16), bh)


def actor_heads_ref(state, packed_params, *, action_size,
                    log_std_min=LOG_STD_MIN, log_std_max=LOG_STD_MAX):
    """Pure-JAX reference using the same bf16-in / f32-accumulate compute path."""
    w1, b1, w4, b4, wh, bh = packed_params
    x = state.astype(jnp.bfloat16)
    h = jnp.maximum(jnp.dot(x, w1, preferred_element_type=jnp.float32) + b1, 0.0)
    h = jnp.maximum(jnp.dot(h.astype(jnp.bfloat16), w4,
                            preferred_element_type=jnp.float32) + b4, 0.0)
    out = jnp.dot(h.astype(jnp.bfloat16), wh,
                  preferred_element_type=jnp.float32) + bh
    mean = out[:, :action_size]
    log_std = jnp.clip(out[:, action_size:2 * action_size],
                       log_std_min, log_std_max)
    return mean, log_std


def actor_forward_ref_f32(state, raw_params):
    """Full-f32 reference (PyTorch-equivalent math) for a coarse sanity check."""
    w1, b1, w4, b4, wm, bm, wls, bls = raw_params
    h = jnp.maximum(state @ w1 + b1, 0.0)
    h = jnp.maximum(h @ w4 + b4, 0.0)
    return h @ wm + bm


if __name__ == "__main__":
    key = jax.random.PRNGKey(0)
    kp, kx = jax.random.split(key)

    batch = 8
    state_size = 16
    hidden_size = 32
    action_size = 4

    raw_params = init_actor_params(kp, state_size, hidden_size, action_size)
    packed_params = pack_actor_params(raw_params, action_size=action_size)
    state = jax.random.normal(kx, (batch, state_size), jnp.float32)

    mean, log_std = actor_heads(state, packed_params, action_size=action_size)
    jax.block_until_ready(mean)

    mean_ref, log_std_ref = actor_heads_ref(state, packed_params,
                                            action_size=action_size)
    mean_f32 = actor_forward_ref_f32(state, raw_params)

    assert mean.shape == (batch, action_size)
    assert log_std.shape == (batch, action_size)
    assert jnp.allclose(mean, mean_ref, atol=1e-4, rtol=1e-4)
    assert jnp.allclose(log_std, log_std_ref, atol=1e-4, rtol=1e-4)
    # coarse check vs. full-f32 PyTorch-equivalent math (bf16 rounding slack)
    assert jnp.allclose(mean, mean_f32, atol=2e-2, rtol=2e-2)

    print("KERNEL_OK")
</pallas_src>

<mosaic_0001>
module attributes {stable_mosaic.version = 11 : i64} {
  func.func @actor_kernel(%arg0: i32, %arg1: memref<8x16xbf16, #tpu.memory_space<vmem>>, %arg2: memref<16x32xbf16, #tpu.memory_space<vmem>>, %arg3: memref<1x32xf32, #tpu.memory_space<vmem>>, %arg4: memref<32x32xbf16, #tpu.memory_space<vmem>>, %arg5: memref<1x32xf32, #tpu.memory_space<vmem>>, %arg6: memref<32x128xbf16, #tpu.memory_space<vmem>>, %arg7: memref<1x128xf32, #tpu.memory_space<vmem>>, %arg8: memref<8x128xf32, #tpu.memory_space<vmem>>) attributes {dimension_semantics = [#tpu.dimension_semantics<parallel>], iteration_bounds = array<i64: 1>, scalar_prefetch = 0 : i64, scratch_operands = 0 : i64, tpu.core_type = #tpu.core_type<tc>, window_params = [{transform_indices = @transform_0, window_bounds = array<i64: 8, 16>}, {pipeline_mode = #tpu.pipeline_mode<synchronous>, transform_indices = @transform_1, window_bounds = array<i64: 16, 32>}, {pipeline_mode = #tpu.pipeline_mode<synchronous>, transform_indices = @transform_2, window_bounds = array<i64: 1, 32>}, {pipeline_mode = #tpu.pipeline_mode<synchronous>, transform_indices = @transform_3, window_bounds = array<i64: 32, 32>}, {pipeline_mode = #tpu.pipeline_mode<synchronous>, transform_indices = @transform_4, window_bounds = array<i64: 1, 32>}, {pipeline_mode = #tpu.pipeline_mode<synchronous>, transform_indices = @transform_5, window_bounds = array<i64: 32, 128>}, {pipeline_mode = #tpu.pipeline_mode<synchronous>, transform_indices = @transform_6, window_bounds = array<i64: 1, 128>}, {transform_indices = @transform_7, window_bounds = array<i64: 8, 128>}]} {
    %c0 = arith.constant 0 : index
    %c0_0 = arith.constant 0 : index
    %0 = vector.load %arg1[%c0, %c0_0] : memref<8x16xbf16, #tpu.memory_space<vmem>>, vector<8x16xbf16>
    %c0_1 = arith.constant 0 : index
    %c0_2 = arith.constant 0 : index
    %1 = vector.load %arg2[%c0_1, %c0_2] : memref<16x32xbf16, #tpu.memory_space<vmem>>, vector<16x32xbf16>
    %cst = arith.constant dense<0.000000e+00> : vector<8x32xf32>
    %2 = tpu.matmul %0, %1, %cst {dimension_numbers = #tpu.dot_dimension_numbers<[1], [0], [0], [1], [0, 0, 1, 1], [], []>} : vector<8x16xbf16>, vector<16x32xbf16>, vector<8x32xf32> -> vector<8x32xf32>
    %c0_3 = arith.constant 0 : index
    %c0_4 = arith.constant 0 : index
    %3 = vector.load %arg3[%c0_3, %c0_4] : memref<1x32xf32, #tpu.memory_space<vmem>>, vector<1x32xf32>
    %4 = vector.broadcast %3 : vector<1x32xf32> to vector<8x32xf32>
    %5 = arith.addf %2, %4 : vector<8x32xf32>
    %cst_5 = arith.constant 0.000000e+00 : f32
    %6 = vector.broadcast %cst_5 : f32 to vector<8x32xf32>
    %7 = arith.maximumf %5, %6 : vector<8x32xf32>
    %8 = arith.truncf %7 : vector<8x32xf32> to vector<8x32xbf16>
    %c0_6 = arith.constant 0 : index
    %c0_7 = arith.constant 0 : index
    %9 = vector.load %arg4[%c0_6, %c0_7] : memref<32x32xbf16, #tpu.memory_space<vmem>>, vector<32x32xbf16>
    %cst_8 = arith.constant dense<0.000000e+00> : vector<8x32xf32>
    %10 = tpu.matmul %8, %9, %cst_8 {dimension_numbers = #tpu.dot_dimension_numbers<[1], [0], [0], [1], [0, 0, 1, 1], [], []>} : vector<8x32xbf16>, vector<32x32xbf16>, vector<8x32xf32> -> vector<8x32xf32>
    %c0_9 = arith.constant 0 : index
    %c0_10 = arith.constant 0 : index
    %11 = vector.load %arg5[%c0_9, %c0_10] : memref<1x32xf32, #tpu.memory_space<vmem>>, vector<1x32xf32>
    %12 = vector.broadcast %11 : vector<1x32xf32> to vector<8x32xf32>
    %13 = arith.addf %10, %12 : vector<8x32xf32>
    %cst_11 = arith.constant 0.000000e+00 : f32
    %14 = vector.broadcast %cst_11 : f32 to vector<8x32xf32>
    %15 = arith.maximumf %13, %14 : vector<8x32xf32>
    %16 = arith.truncf %15 : vector<8x32xf32> to vector<8x32xbf16>
    %c0_12 = arith.constant 0 : index
    %c0_13 = arith.constant 0 : index
    %17 = vector.load %arg6[%c0_12, %c0_13] : memref<32x128xbf16, #tpu.memory_space<vmem>>, vector<32x128xbf16>
    %cst_14 = arith.constant dense<0.000000e+00> : vector<8x128xf32>
    %18 = tpu.matmul %16, %17, %cst_14 {dimension_numbers = #tpu.dot_dimension_numbers<[1], [0], [0], [1], [0, 0, 1, 1], [], []>} : vector<8x32xbf16>, vector<32x128xbf16>, vector<8x128xf32> -> vector<8x128xf32>
    %c0_15 = arith.constant 0 : index
    %c0_16 = arith.constant 0 : index
    %19 = vector.load %arg7[%c0_15, %c0_16] : memref<1x128xf32, #tpu.memory_space<vmem>>, vector<1x128xf32>
    %20 = vector.broadcast %19 : vector<1x128xf32> to vector<8x128xf32>
    %21 = arith.addf %18, %20 : vector<8x128xf32>
    %22 = tpu.iota {dimensions = array<i32: 1>} : vector<8x128xi32>
    %c4_i32 = arith.constant 4 : i32
    %23 = vector.broadcast %c4_i32 : i32 to vector<8x128xi32>
    %24 = arith.cmpi sge, %22, %23 : vector<8x128xi32>
    %c8_i32 = arith.constant 8 : i32
    %25 = vector.broadcast %c8_i32 : i32 to vector<8x128xi32>
    %26 = arith.cmpi slt, %22, %25 : vector<8x128xi32>
    %27 = arith.andi %24, %26 : vector<8x128xi1>
    %cst_17 = arith.constant -2.000000e+01 : f32
    %cst_18 = arith.constant 2.000000e+00 : f32
    %28 = vector.broadcast %cst_17 : f32 to vector<8x128xf32>
    %29 = arith.maximumf %28, %21 : vector<8x128xf32>
    %30 = vector.broadcast %cst_18 : f32 to vector<8x128xf32>
    %31 = arith.minimumf %30, %29 : vector<8x128xf32>
    %32 = arith.select %27, %31, %21 : vector<8x128xi1>, vector<8x128xf32>
    %c0_19 = arith.constant 0 : index
    %c0_20 = arith.constant 0 : index
    %33 = vector.load %arg8[%c0_19, %c0_20] : memref<8x128xf32, #tpu.memory_space<vmem>>, vector<8x128xf32>
    tpu.vector_store %arg8[%c0_19, %c0_20], %32 {strides = array<i32>} : memref<8x128xf32, #tpu.memory_space<vmem>>, vector<8x128xf32>,
    return
  }
  func.func @transform_0(%arg0: i32) -> (i32, i32) {
    %c0_i32 = arith.constant 0 : i32
    %c0_i32_0 = arith.constant 0 : i32
    return %arg0, %c0_i32 : i32, i32
  }
  func.func @transform_1(%arg0: i32) -> (i32, i32) {
    %c0_i32 = arith.constant 0 : i32
    %c0_i32_0 = arith.constant 0 : i32
    %c0_i32_1 = arith.constant 0 : i32
    return %c0_i32, %c0_i32_0 : i32, i32
  }
  func.func @transform_2(%arg0: i32) -> (i32, i32) {
    %c0_i32 = arith.constant 0 : i32
    %c0_i32_0 = arith.constant 0 : i32
    %c0_i32_1 = arith.constant 0 : i32
    return %c0_i32, %c0_i32_0 : i32, i32
  }
  func.func @transform_3(%arg0: i32) -> (i32, i32) {
    %c0_i32 = arith.constant 0 : i32
    %c0_i32_0 = arith.constant 0 : i32
    %c0_i32_1 = arith.constant 0 : i32
    return %c0_i32, %c0_i32_0 : i32, i32
  }
  func.func @transform_4(%arg0: i32) -> (i32, i32) {
    %c0_i32 = arith.constant 0 : i32
    %c0_i32_0 = arith.constant 0 : i32
    %c0_i32_1 = arith.constant 0 : i32
    return %c0_i32, %c0_i32_0 : i32, i32
  }
  func.func @transform_5(%arg0: i32) -> (i32, i32) {
    %c0_i32 = arith.constant 0 : i32
    %c0_i32_0 = arith.constant 0 : i32
    %c0_i32_1 = arith.constant 0 : i32
    return %c0_i32, %c0_i32_0 : i32, i32
  }
  func.func @transform_6(%arg0: i32) -> (i32, i32) {
    %c0_i32 = arith.constant 0 : i32
    %c0_i32_0 = arith.constant 0 : i32
    %c0_i32_1 = arith.constant 0 : i32
    return %c0_i32, %c0_i32_0 : i32, i32
  }
  func.func @transform_7(%arg0: i32) -> (i32, i32) {
    %c0_i32 = arith.constant 0 : i32
    %c0_i32_0 = arith.constant 0 : i32
    return %arg0, %c0_i32 : i32, i32
  }
}

</mosaic_0001>

<bundles_post_ra>
// kernel: tpu_custom_call.1
= control target key start
LH: loop header
LB: loop body
LE: loop exit
PB: predicated region body
PF: predicated region fallthrough
CT: control target
= control target key end

     0   :  { %12 = vsyncpa [#allocation3], 0  ;;  %s554_s0 = inlined_call_operand.hbm [shape: bf16[8,16], index: 0, kind: input, shape index: {}]   ;;  %s555_s1 = inlined_call_operand.hbm [shape: bf16[16,32], index: 1, kind: input, shape index: {}]   ;;  %s556_s2 = inlined_call_operand.vmem [shape: f32[1,32], index: 2, kind: input, shape index: {}]   ;;  %s557_s3 = inlined_call_operand.hbm [shape: bf16[32,32], index: 3, kind: input, shape index: {}]   ;;  %s558_s4 = inlined_call_operand.vmem [shape: f32[1,32], index: 4, kind: input, shape index: {}]   ;;  %s559_s5 = inlined_call_operand.vmem [shape: bf16[32,128], index: 5, kind: input, shape index: {}]   ;;  %s560_s6 = inlined_call_operand.vmem [shape: f32[1,128], index: 6, kind: input, shape index: {}]   ;;  %s561_s7 = inlined_call_operand.hbm [shape: f32[8,128], index: 7, kind: output, shape index: {}]  }
   0x1   :  { %13 = vsyncpa [#allocation6], 0 }
   0x2   :  { %14 = vsyncpa [#allocation4], 0  ;;  %s437_s24 = smov [#allocation5]   ;;  %s343_s28 = scalar_lea.hbm %s555_s1, 128 }
   0x3   :  { %s30_s25 = sshll.u32 %s437_s24, 4  ;;  %p344_p0 = scmp.ne.s32.totalorder %s555_s1, %s343_s28  ;;  %s31_s25 = int_to_ptr.vmem [resolvable:$true] %s30_s25 }
   0x4   :  { %p347_p1 = scmp.lt.u32.totalorder %s343_s28, %s555_s1 }
   0x6   :  { %p349_p2 = pnand %p347_p1, %p344_p0 }
   0x8   :  { %352 = shalt.err (!%p349_p2)
}
   0x9   :  { %s353_s10 = scalar_lea.vmem %s31_s25, 128  ;;  %p358_p4 = scmp.lt.s32.totalorder %s31_s25, %s31_s25 }
   0xa   :  { %p354_p3 = scmp.ne.s32.totalorder %s31_s25, %s353_s10  ;;  %p359_p5 = scmp.lt.s32.totalorder %s353_s10, %s353_s10 }
   0xc   :  { %p360_p6 = por %p359_p5, %p358_p4 }
   0xe   :  { %p361_p7 = pnand %p360_p6, %p354_p3 }
  0x10   :  { %364 = shalt.err (!%p361_p7)
}
  0x11   :  { %s438_s11 = smov 64   ;;  %s439_s12 = smov 4  }
  0x12   :  { %36 = dma.hbm_to_vmem [thread:$0]  %s555_s1, 128, %s31_s25, [#allocation6], %s438_s11, %s438_s11, %s439_s12  }
  0x13   :  { %s440_s15 = smov [#allocation2]   ;;  %s441_s17 = smov [#allocation7]  }
  0x14   :  { %s21_s16 = sshll.u32 %s440_s15, 4  ;;  %s44_s18 = sshll.u32 %s441_s17, 4  ;;  %s22_s16 = int_to_ptr.vmem [resolvable:$true] %s21_s16  ;;  %s45_s18 = int_to_ptr.vmem [resolvable:$true] %s44_s18 }
  0x15   :  { %s365_s21 = scalar_lea.hbm %s554_s0, 64 }
  0x16   :  { %p366_p8 = scmp.ne.s32.totalorder %s554_s0, %s365_s21  ;;  %p369_p9 = scmp.lt.u32.totalorder %s365_s21, %s554_s0 }
  0x18   :  { %p371_p10 = pnand %p369_p9, %p366_p8 }
  0x1a   :  { %374 = shalt.err (!%p371_p10)
}
  0x1b   :  { %s375_s1 = scalar_lea.vmem %s22_s16, 64  ;;  %p380_p12 = scmp.lt.s32.totalorder %s22_s16, %s22_s16 }
  0x1c   :  { %p376_p11 = scmp.ne.s32.totalorder %s22_s16, %s375_s1  ;;  %p381_p13 = scmp.lt.s32.totalorder %s375_s1, %s375_s1 }
  0x1e   :  { %p382_p0 = por %p381_p13, %p380_p12 }
  0x20   :  { %p383_p1 = pnand %p382_p0, %p376_p11 }
  0x22   :  { %386 = shalt.err (!%p383_p1)
}
  0x23   :  { %24 = dma.hbm_to_vmem [thread:$0]  %s554_s0, 64, %s22_s16, [#allocation3]  }
  0x24   :  { %s387_s30 = scalar_lea.hbm %s557_s3, 256 }
  0x25   :  { %p388_p2 = scmp.ne.s32.totalorder %s557_s3, %s387_s30  ;;  %p391_p3 = scmp.lt.u32.totalorder %s387_s30, %s557_s3 }
  0x27   :  { %p393_p4 = pnand %p391_p3, %p388_p2 }
  0x29   :  { %396 = shalt.err (!%p393_p4)
}
  0x2a   :  { %s397_s14 = scalar_lea.vmem %s45_s18, 256  ;;  %p402_p6 = scmp.lt.s32.totalorder %s45_s18, %s45_s18 }
  0x2b   :  { %p398_p5 = scmp.ne.s32.totalorder %s45_s18, %s397_s14  ;;  %p403_p7 = scmp.lt.s32.totalorder %s397_s14, %s397_s14 }
  0x2d   :  { %p404_p8 = por %p403_p7, %p402_p6 }
  0x2f   :  { %p405_p9 = pnand %p404_p8, %p398_p5 }
  0x31   :  { %408 = shalt.err (!%p405_p9)
}
  0x32   :  { %50 = dma.hbm_to_vmem [thread:$0]  %s557_s3, 256, %s45_s18, [#allocation6], %s438_s11, %s438_s11, %s439_s12  }
  0x33   :  { %431 = dma.done.wait [#allocation3], 64  }
  0x34   :  { %432 = vsyncadd [#allocation3], 4294967232 }
  0x35   :  { %433 = dma.done.wait [#allocation6], 384  }
  0x36   :  { %434 = vsyncadd [#allocation6], 4294966912  ;;  %v442_v0 = vmov 0.0   ;;  %vm443_vm0 = vmmov 0   ;;  %v338_v1 = vld [vmem:[#allocation5] sm:$0xff]   ;;  %vm83_vm1 = vcmask 130048   ;;  %v264_v23 = vlaneseq }
  0x37   :  { %308 = vmatprep.subr.bf16.mxu0 %v442_v0  ;;  %310 = vmatprep.mubr.msk.bf16.mxu0 %vm443_vm0, %v442_v0  ;;  %v67_v2 = vld [vmem:[#allocation2] sm:$0xf]  ;;  %v339_v3 = vld [vmem:[#allocation7] sm:$0xff]   ;;  %v340_v4 = vld [vmem:[#allocation7 + $0x8] sm:$0xff]   ;;  %vm152_vm2 = vcmask 261120  }
  0x38   :  { %314 = vmatprep.subr.bf16.mxu1 %v442_v0  ;;  %318 = vmatprep.mubr.msk.bf16.mxu1 %vm443_vm0, %v442_v0  ;;  %v341_v5 = vld [vmem:[%s559_s5] sm:$0xff]   ;;  %v342_v14 = vld [vmem:[%s559_s5 + $0x8] sm:$0xff]   ;;  %v265_v24 = vand.u32 127, %v264_v23 }
  0x39   :  { %309 = vmatpush3.bf16.msra.mxu0 %v338_v1  ;;  %315 = vmatpush3.bf16.msra.mxu1 %v339_v3  ;;  %v289_v6 = vld [vmem:[%s556_s2] ss:$0 sm:$0xff] }
  0x3a   :  { %322 = vmatprep.subr.bf16.mxu0 %v442_v0  ;;  %316 = vmatprep.subr.bf16.mxu1 %v442_v0  ;;  %v292_v15 = vld [vmem:[%s558_s4] ss:$0 sm:$0xff]  ;;  %vm266_vm3 = vcmp.ge.s32.totalorder %v265_v24, 4  ;;  %vm267_vm4 = vcmp.lt.s32.totalorder %v265_v24, 8  ;;  %s444_s4 = smov [#allocation8]  }
  0x3b   :  { %v296_v25 = vld [vmem:[%s560_s6] ss:$0 sm:$0xff]  ;;  %s279_s5 = sshll.u32 %s444_s4, 4  ;;  %vm268_vm5 = vmand %vm266_vm3, %vm267_vm4  ;;  %s280_s5 = int_to_ptr.vmem [resolvable:$true] %s279_s5 }
  0x3c   :  { %311 = vmatmul.mubr.msk.bf16.vlgmr.msra.gmra.mrb[0].mxu0 %vm83_vm1, %v67_v2  ;;  %s409_s22 = scalar_lea.vmem %s280_s5, 128  ;;  %p414_p11 = scmp.lt.s32.totalorder %s280_s5, %s280_s5 }
  0x3d   :  { %326 = vmatprep.mubr.msk.bf16.mxu0 %vm443_vm0, %v442_v0  ;;  %317 = vmatpush3.bf16.msra.mxu1 %v340_v4  ;;  %p410_p10 = scmp.ne.s32.totalorder %s280_s5, %s409_s22  ;;  %p415_p12 = scmp.lt.s32.totalorder %s409_s22, %s409_s22 }
  0x3e   :  { %323 = vmatpush3.bf16.msra.mxu0 %v341_v5 }
  0x3f   :  { %324 = vmatprep.subr.bf16.mxu0 %v442_v0  ;;  %p416_p13 = por %p415_p12, %p414_p11 }
  0x41   :  { %p417_p0 = pnand %p416_p13, %p410_p10 }
  0x42   :  { %325 = vmatpush3.bf16.msra.mxu0 %v342_v14 }
 0x10f   :  { %v121_v7 = vpop.f32.mrb[0].mxu0 }
 0x110   :  { %v122_v8 = vadd.f32 %v289_v6, %v121_v7  ;;  %v312_v9 = vpop.f32.mrb[1].mxu0 }
 0x111   :  { %v124_v10 = vpop.f32.mrb[2].mxu0 }
 0x112   :  { %v127_v11 = vmax.f32 %v122_v8, 0.0  ;;  %v313_v12 = vpop.f32.mrb[3].mxu0 }
 0x114   :  { %v128_v13 = vpack.c.bf16 %v127_v11, %v127_v11 }
 0x116   :  { %319 = vmatmul.mubr.msk.bf16.vlgmr.msra.gmra.mrb[0].mxu1 %vm152_vm2, %v128_v13 }
 0x1e9   :  { %v190_v16 = vpop.f32.mrb[0].mxu1 }
 0x1ea   :  { %v191_v17 = vadd.f32 %v292_v15, %v190_v16  ;;  %v320_v18 = vpop.f32.mrb[1].mxu1 }
 0x1eb   :  { %v193_v19 = vpop.f32.mrb[2].mxu1 }
 0x1ec   :  { %v196_v20 = vmax.f32 %v191_v17, 0.0  ;;  %v321_v21 = vpop.f32.mrb[3].mxu1 }
 0x1ee   :  { %v197_v22 = vpack.c.bf16 %v196_v20, %v196_v20 }
 0x1f0   :  { %327 = vmatmul.mubr.msk.bf16.vlgmr.msra.gmra.mrb[4].mxu0 %vm152_vm2, %v197_v22 }
 0x2c3   :  { %v258_v26 = vpop.f32.mrb[4].mxu0 }
 0x2c4   :  { %v259_v27 = vadd.f32 %v296_v25, %v258_v26  ;;  %v328_v28 = vpop.f32.mrb[5].mxu0 }
 0x2c5   :  { %v261_v29 = vpop.f32.mrb[6].mxu0 }
 0x2c6   :  { %v269_v30 = vmax.f32 %v259_v27, -20.0  ;;  %v329_v31 = vpop.f32.mrb[7].mxu0 }
 0x2c8   :  { %v270_v32 = vmin.f32 %v269_v30, 2.0 }
 0x2ca   :  { %v271_v33 = vsel %vm268_vm5, %v270_v32, %v259_v27 }
 0x2cb   :  { %272 = vst [vmem:[#allocation8] sm:$0xff] %v271_v33 }
 0x2cc   :  { %420 = shalt.err (!%p417_p0)
}
 0x2cd   :  { %s421_s24 = scalar_lea.hbm %s561_s7, 128 }
 0x2ce   :  { %p422_p1 = scmp.ne.s32.totalorder %s561_s7, %s421_s24  ;;  %p425_p2 = scmp.lt.u32.totalorder %s421_s24, %s561_s7 }
 0x2d0   :  { %p427_p3 = pnand %p425_p2, %p422_p1 }
 0x2d2   :  { %430 = shalt.err (!%p427_p3)
}
 0x2d3   :  { %282 = dma.vmem_to_hbm [thread:$0]  %s280_s5, 128, %s561_s7, [#allocation4]  }
 0x2d4   :  { %435 = dma.done.wait [#allocation4], 128  }
 0x2d5   :  { %436 = vsyncadd [#allocation4], 4294967168 }
 0x2d6   :  { %286 = vsyncpa [#allocation3], 1 }
 0x2d7   :  { %287 = vsyncpa [#allocation6], 1 }
 0x2d8   :  { %288 = vsyncpa [#allocation4], 1 }

</bundles_post_ra>
